<compile_context>
chip_gen: v7x
topology: tpu7x:2x2x1
jax: 0.10.0
libtpu: 0.0.40
codegen_flags: <defaults>
</compile_context>

<pallas_src>
import math
from functools import partial

import jax
import jax.numpy as jnp
from jax.experimental import pallas as pl
from jax.experimental.pallas import tpu as pltpu

_VMEM_LIMIT = 32 * 1024 * 1024  # safe on v5e/v6e/v7x (raises v5e's 16 MiB default)


def _round_up(x, m):
    return (x + m - 1) // m * m


# ----------------------------------------------------------------------------
# Kernels
# ----------------------------------------------------------------------------
def _embed_pos_kernel(x_ref, pe_ref, w1_ref, b1_ref, w2_ref, b2_ref, o_ref):
    """chart_embedder on a (TM, F) token tile + positional-encoding add."""
    x = x_ref[...].astype(jnp.bfloat16)                       # (TM, F)
    h = jnp.dot(x, w1_ref[...], preferred_element_type=jnp.float32) + b1_ref[...]
    h = jnp.maximum(h, 0.0)
    h = jnp.dot(h.astype(jnp.bfloat16), w2_ref[...],
                preferred_element_type=jnp.float32) + b2_ref[...]
    o_ref[...] = h + pe_ref[...]                              # PE already per-token


def _layer_norm(x, gamma, beta, eps=1e-5):
    mu = jnp.mean(x, axis=-1, keepdims=True)
    var = jnp.mean((x - mu) ** 2, axis=-1, keepdims=True)
    return (x - mu) * jax.lax.rsqrt(var + eps) * gamma + beta


def _encoder_stack_kernel(x_ref, wqkv_ref, bqkv_ref, wo_ref, bo_ref,
                          g1_ref, be1_ref, wf1_ref, bf1_ref, wf2_ref, bf2_ref,
                          g2_ref, be2_ref, o_ref, h_scr, *, n_heads):
    """Fused nn.TransformerEncoder stack, one (batch, layer) grid step.

    grid = (B, L); the layer axis is 'arbitrary' and the (S, D) activation is
    carried across it in the `h_scr` VMEM scratch.  Post-norm layer, eval mode.
    """
    layer = pl.program_id(1)

    @pl.when(layer == 0)
    def _():
        h_scr[...] = x_ref[...]

    x = h_scr[...]                                            # (S, D) f32
    S, D = x.shape
    hd = D // n_heads
    scale = 1.0 / math.sqrt(hd)

    # Fused QKV projection: one (S, D) @ (D, 3D) MXU pass, f32 accumulation.
    qkv = jnp.dot(x.astype(jnp.bfloat16), wqkv_ref[...],
                  preferred_element_type=jnp.float32) + bqkv_ref[...]
    q = qkv[:, :D] * scale
    k = qkv[:, D:2 * D]
    v = qkv[:, 2 * D:]

    # Batched multi-head attention: heads stacked as a leading batch dim so
    # both score and context products are single batched einsums.
    qh = jnp.stack([q[:, h * hd:(h + 1) * hd] for h in range(n_heads)],
                   axis=0).astype(jnp.bfloat16)               # (H, S, hd)
    kh = jnp.stack([k[:, h * hd:(h + 1) * hd] for h in range(n_heads)],
                   axis=0).astype(jnp.bfloat16)
    vh = jnp.stack([v[:, h * hd:(h + 1) * hd] for h in range(n_heads)],
                   axis=0).astype(jnp.bfloat16)

    # TODO(synk): for long sequences this should become an online-softmax
    # (flash) loop over K/V tiles instead of the dense (H, S, S) score matrix.
    s = jnp.einsum("hqd,hkd->hqk", qh, kh,
                   preferred_element_type=jnp.float32)        # (H, S, S)
    s = s - jnp.max(s, axis=-1, keepdims=True)
    p = jnp.exp(s)
    p = p * pl.reciprocal(jnp.sum(p, axis=-1, keepdims=True), approx=True)
    ctx = jnp.einsum("hqk,hkd->hqd", p.astype(jnp.bfloat16), vh,
                     preferred_element_type=jnp.float32)      # (H, S, hd)

    # Merge heads (lane concat) and do a single D-wide out-projection.
    ctx2 = jnp.concatenate([ctx[h] for h in range(n_heads)], axis=-1)  # (S, D)
    attn = jnp.dot(ctx2.astype(jnp.bfloat16), wo_ref[...],
                   preferred_element_type=jnp.float32) + bo_ref[...]

    x1 = _layer_norm(x + attn, g1_ref[...], be1_ref[...])

    ff = jnp.dot(x1.astype(jnp.bfloat16), wf1_ref[...],
                 preferred_element_type=jnp.float32) + bf1_ref[...]
    ff = jnp.maximum(ff, 0.0)
    y = jnp.dot(ff.astype(jnp.bfloat16), wf2_ref[...],
                preferred_element_type=jnp.float32) + bf2_ref[...]

    out = _layer_norm(x1 + y, g2_ref[...], be2_ref[...])
    h_scr[...] = out

    @pl.when(layer == pl.num_programs(1) - 1)
    def _():
        o_ref[...] = out


def _pool_fc_kernel(x_ref, wa_ref, ba_ref, wfc_ref, bfc_ref, o_ref):
    """AttentivePooling (softmax over seq, scores via VPU reduction) + fc.

    MultiSampleDropout in eval mode reduces exactly to a single fc(x).
    Output is lane-dense (num_classes zero-padded to 128); wrapper slices.
    """
    x = x_ref[...]                                            # (TB, S, D) f32
    wa = wa_ref[...]                                          # (1, D)
    scores = jnp.sum(x * wa[None, :, :], axis=-1) + ba_ref[...]   # (TB, S)
    scores = scores - jnp.max(scores, axis=-1, keepdims=True)
    p = jnp.exp(scores)
    att = p * pl.reciprocal(jnp.sum(p, axis=-1, keepdims=True), approx=True)
    pooled = jnp.sum(x * att[:, :, None], axis=1)             # (TB, D)
    o_ref[...] = jnp.dot(pooled.astype(jnp.bfloat16), wfc_ref[...],
                         preferred_element_type=jnp.float32) + bfc_ref[...]


# ----------------------------------------------------------------------------
# Parameters (matmul weights stored bf16, (in_dim, out_dim); biases/LN in f32)
# ----------------------------------------------------------------------------
def init_params(key, chart_features, d_model, num_classes, n_heads,
                num_encoders, dim_ff=2048):
    assert d_model % n_heads == 0
    dh = d_model // 2
    c_pad = _round_up(max(num_classes, 1), 128)

    def nrm(k, shape, scale=0.05):
        return jax.random.normal(k, shape, jnp.float32) * scale

    keys = iter(jax.random.split(key, 8 + 8 * num_encoders))
    p = {
        "d_model": d_model, "n_heads": n_heads, "num_classes": num_classes,
        "emb_w1": nrm(next(keys), (chart_features, dh)).astype(jnp.bfloat16),
        "emb_b1": nrm(next(keys), (1, dh)),
        "emb_w2": nrm(next(keys), (dh, d_model)).astype(jnp.bfloat16),
        "emb_b2": nrm(next(keys), (1, d_model)),
        "att_w": nrm(next(keys), (1, d_model)),
        "att_b": nrm(next(keys), (1, 1)),
    }
    fc_w = nrm(next(keys), (d_model, num_classes))
    fc_b = nrm(next(keys), (1, num_classes))
    p["fc_w"] = jnp.zeros((d_model, c_pad), jnp.bfloat16
                          ).at[:, :num_classes].set(fc_w.astype(jnp.bfloat16))
    p["fc_b"] = jnp.zeros((1, c_pad), jnp.float32).at[:, :num_classes].set(fc_b)

    wqkv, bqkv, wo, bo = [], [], [], []
    wf1, bf1, wf2, bf2 = [], [], [], []
    for _ in range(num_encoders):
        wqkv.append(nrm(next(keys), (d_model, 3 * d_model)))
        bqkv.append(nrm(next(keys), (1, 3 * d_model)))
        wo.append(nrm(next(keys), (d_model, d_model)))
        bo.append(nrm(next(keys), (1, d_model)))
        wf1.append(nrm(next(keys), (d_model, dim_ff)))
        bf1.append(nrm(next(keys), (1, dim_ff)))
        wf2.append(nrm(next(keys), (dim_ff, d_model)))
        bf2.append(nrm(next(keys), (1, d_model)))
    p["wqkv"] = jnp.stack(wqkv).astype(jnp.bfloat16)
    p["bqkv"] = jnp.stack(bqkv)
    p["wo"] = jnp.stack(wo).astype(jnp.bfloat16)
    p["bo"] = jnp.stack(bo)
    p["wf1"] = jnp.stack(wf1).astype(jnp.bfloat16)
    p["bf1"] = jnp.stack(bf1)
    p["wf2"] = jnp.stack(wf2).astype(jnp.bfloat16)
    p["bf2"] = jnp.stack(bf2)
    p["g1"] = jnp.ones((num_encoders, 1, d_model), jnp.float32)
    p["be1"] = jnp.zeros((num_encoders, 1, d_model), jnp.float32)
    p["g2"] = jnp.ones((num_encoders, 1, d_model), jnp.float32)
    p["be2"] = jnp.zeros((num_encoders, 1, d_model), jnp.float32)
    return p


def _positional_rows(batch, d_model):
    # Reproduces PositionalEncoding.pe[:batch, 0, :] (PyTorch quirk: indexed by
    # the batch dimension of a batch_first tensor).
    pos = jnp.arange(batch, dtype=jnp.float32)[:, None]
    div = jnp.exp(jnp.arange(0, d_model, 2, dtype=jnp.float32)
                  * (-math.log(10000.0) / d_model))
    pe = jnp.zeros((batch, d_model), jnp.float32)
    pe = pe.at[:, 0::2].set(jnp.sin(pos * div))
    pe = pe.at[:, 1::2].set(jnp.cos(pos * div))
    return pe


# ----------------------------------------------------------------------------
# Forward pass
# ----------------------------------------------------------------------------
def neural_clf_forward(params, x, *, token_tile=256):
    """NeuralCLF forward in eval mode. x: (B, S, chart_features) float32."""
    B, S, F = x.shape
    D = params["d_model"]
    H = params["n_heads"]
    C = params["num_classes"]
    Dh = params["emb_w1"].shape[1]
    L = params["wqkv"].shape[0]
    Fff = params["wf1"].shape[2]
    C_pad = params["fc_w"].shape[1]

    # ---- Stage 1: embedder + positional encoding (token-tiled grid) --------
    M = B * S
    TM = min(token_tile, _round_up(M, 8))
    M_pad = _round_up(M, TM)
    x_flat = x.reshape(M, F)
    pe_tok = jnp.repeat(_positional_rows(B, D), S, axis=0)    # (M, D)
    if M_pad != M:
        x_flat = jnp.pad(x_flat, ((0, M_pad - M), (0, 0)))
        pe_tok = jnp.pad(pe_tok, ((0, M_pad - M), (0, 0)))

    h_flat = pl.pallas_call(
        _embed_pos_kernel,
        out_shape=jax.ShapeDtypeStruct((M_pad, D), jnp.float32),
        grid=(M_pad // TM,),
        in_specs=[
            pl.BlockSpec((TM, F), lambda i: (i, 0)),
            pl.BlockSpec((TM, D), lambda i: (i, 0)),
            pl.BlockSpec((F, Dh), lambda i: (0, 0)),
            pl.BlockSpec((1, Dh), lambda i: (0, 0)),
            pl.BlockSpec((Dh, D), lambda i: (0, 0)),
            pl.BlockSpec((1, D), lambda i: (0, 0)),
        ],
        out_specs=pl.BlockSpec((TM, D), lambda i: (i, 0)),
        compiler_params=pltpu.CompilerParams(
            dimension_semantics=("parallel",), vmem_limit_bytes=_VMEM_LIMIT),
    )(x_flat, pe_tok, params["emb_w1"], params["emb_b1"],
      params["emb_w2"], params["emb_b2"])
    h = h_flat[:M].reshape(B, S, D)

    # ---- Stage 2: fused transformer encoder stack ---------------------------
    h = pl.pallas_call(
        partial(_encoder_stack_kernel, n_heads=H),
        out_shape=jax.ShapeDtypeStruct((B, S, D), jnp.float32),
        grid=(B, L),
        in_specs=[
            pl.BlockSpec((None, S, D), lambda b, l: (b, 0, 0)),        # x
            pl.BlockSpec((None, D, 3 * D), lambda b, l: (l, 0, 0)),    # wqkv
            pl.BlockSpec((None, 1, 3 * D), lambda b, l: (l, 0, 0)),    # bqkv
            pl.BlockSpec((None, D, D), lambda b, l: (l, 0, 0)),        # wo
            pl.BlockSpec((None, 1, D), lambda b, l: (l, 0, 0)),        # bo
            pl.BlockSpec((None, 1, D), lambda b, l: (l, 0, 0)),        # g1
            pl.BlockSpec((None, 1, D), lambda b, l: (l, 0, 0)),        # be1
            pl.BlockSpec((None, D, Fff), lambda b, l: (l, 0, 0)),      # wf1
            pl.BlockSpec((None, 1, Fff), lambda b, l: (l, 0, 0)),      # bf1
            pl.BlockSpec((None, Fff, D), lambda b, l: (l, 0, 0)),      # wf2
            pl.BlockSpec((None, 1, D), lambda b, l: (l, 0, 0)),        # bf2
            pl.BlockSpec((None, 1, D), lambda b, l: (l, 0, 0)),        # g2
            pl.BlockSpec((None, 1, D), lambda b, l: (l, 0, 0)),        # be2
        ],
        out_specs=pl.BlockSpec((None, S, D), lambda b, l: (b, 0, 0)),
        scratch_shapes=[pltpu.VMEM((S, D), jnp.float32)],
        compiler_params=pltpu.CompilerParams(
            dimension_semantics=("parallel", "arbitrary"),
            vmem_limit_bytes=_VMEM_LIMIT),
    )(h, params["wqkv"], params["bqkv"], params["wo"], params["bo"],
      params["g1"], params["be1"], params["wf1"], params["bf1"],
      params["wf2"], params["bf2"], params["g2"], params["be2"])

    # ---- Stage 3: attentive pooling + classifier (lane-dense output) --------
    # TODO(synk): MultiSampleDropout in training mode needs per-rate RNG masks;
    # in eval mode it is exactly a single fc(x), implemented here.
    TB = min(8, B)
    B_pad = _round_up(B, TB)
    h_pool = h if B_pad == B else jnp.pad(h, ((0, B_pad - B), (0, 0), (0, 0)))
    logits = pl.pallas_call(
        _pool_fc_kernel,
        out_shape=jax.ShapeDtypeStruct((B_pad, C_pad), jnp.float32),
        grid=(B_pad // TB,),
        in_specs=[
            pl.BlockSpec((TB, S, D), lambda i: (i, 0, 0)),
            pl.BlockSpec((1, D), lambda i: (0, 0)),
            pl.BlockSpec((1, 1), lambda i: (0, 0)),
            pl.BlockSpec((D, C_pad), lambda i: (0, 0)),
            pl.BlockSpec((1, C_pad), lambda i: (0, 0)),
        ],
        out_specs=pl.BlockSpec((TB, C_pad), lambda i: (i, 0)),
        compiler_params=pltpu.CompilerParams(
            dimension_semantics=("parallel",), vmem_limit_bytes=_VMEM_LIMIT),
    )(h_pool, params["att_w"], params["att_b"], params["fc_w"], params["fc_b"])
    return logits[:B, :C]


if __name__ == "__main__":
    # Small shapes consistent with the module.
    chart_features, seq_len, d_model = 4, 8, 32
    num_classes, n_heads, num_encoders = 3, 4, 2
    batch = 2

    key = jax.random.PRNGKey(0)
    pkey, xkey = jax.random.split(key)
    params = init_params(pkey, chart_features, d_model, num_classes,
                         n_heads, num_encoders)
    x = jax.random.normal(xkey, (batch, seq_len, chart_features), jnp.float32)

    # token_tile=8 exercises a multi-step token grid at these tiny shapes.
    out = neural_clf_forward(params, x, token_tile=8)
    jax.block_until_ready(out)
    assert out.shape == (batch, num_classes)
    print("KERNEL_OK")
</pallas_src>

<mosaic_0001>
module attributes {stable_mosaic.version = 11 : i64} {
  func.func @_embed_pos_kernel(%arg0: i32, %arg1: memref<8x4xf32, #tpu.memory_space<vmem>>, %arg2: memref<8x32xf32, #tpu.memory_space<vmem>>, %arg3: memref<4x16xbf16, #tpu.memory_space<vmem>>, %arg4: memref<1x16xf32, #tpu.memory_space<vmem>>, %arg5: memref<16x32xbf16, #tpu.memory_space<vmem>>, %arg6: memref<1x32xf32, #tpu.memory_space<vmem>>, %arg7: memref<8x32xf32, #tpu.memory_space<vmem>>) attributes {dimension_semantics = [#tpu.dimension_semantics<parallel>], iteration_bounds = array<i64: 2>, scalar_prefetch = 0 : i64, scratch_operands = 0 : i64, tpu.core_type = #tpu.core_type<tc>, window_params = [{transform_indices = @transform_0, window_bounds = array<i64: 8, 4>}, {transform_indices = @transform_1, window_bounds = array<i64: 8, 32>}, {pipeline_mode = #tpu.pipeline_mode<synchronous>, transform_indices = @transform_2, window_bounds = array<i64: 4, 16>}, {pipeline_mode = #tpu.pipeline_mode<synchronous>, transform_indices = @transform_3, window_bounds = array<i64: 1, 16>}, {pipeline_mode = #tpu.pipeline_mode<synchronous>, transform_indices = @transform_4, window_bounds = array<i64: 16, 32>}, {pipeline_mode = #tpu.pipeline_mode<synchronous>, transform_indices = @transform_5, window_bounds = array<i64: 1, 32>}, {transform_indices = @transform_6, window_bounds = array<i64: 8, 32>}]} {
    %c0 = arith.constant 0 : index
    %c0_0 = arith.constant 0 : index
    %0 = vector.load %arg1[%c0, %c0_0] : memref<8x4xf32, #tpu.memory_space<vmem>>, vector<8x4xf32>
    %1 = arith.truncf %0 : vector<8x4xf32> to vector<8x4xbf16>
    %c0_1 = arith.constant 0 : index
    %c0_2 = arith.constant 0 : index
    %2 = vector.load %arg3[%c0_1, %c0_2] : memref<4x16xbf16, #tpu.memory_space<vmem>>, vector<4x16xbf16>
    %cst = arith.constant dense<0.000000e+00> : vector<8x16xf32>
    %3 = tpu.matmul %1, %2, %cst {dimension_numbers = #tpu.dot_dimension_numbers<[1], [0], [0], [1], [0, 0, 1, 1], [], []>} : vector<8x4xbf16>, vector<4x16xbf16>, vector<8x16xf32> -> vector<8x16xf32>
    %c0_3 = arith.constant 0 : index
    %c0_4 = arith.constant 0 : index
    %4 = vector.load %arg4[%c0_3, %c0_4] : memref<1x16xf32, #tpu.memory_space<vmem>>, vector<1x16xf32>
    %5 = vector.broadcast %4 : vector<1x16xf32> to vector<8x16xf32>
    %6 = arith.addf %3, %5 : vector<8x16xf32>
    %cst_5 = arith.constant 0.000000e+00 : f32
    %7 = vector.broadcast %cst_5 : f32 to vector<8x16xf32>
    %8 = arith.maximumf %6, %7 : vector<8x16xf32>
    %9 = arith.truncf %8 : vector<8x16xf32> to vector<8x16xbf16>
    %c0_6 = arith.constant 0 : index
    %c0_7 = arith.constant 0 : index
    %10 = vector.load %arg5[%c0_6, %c0_7] : memref<16x32xbf16, #tpu.memory_space<vmem>>, vector<16x32xbf16>
    %cst_8 = arith.constant dense<0.000000e+00> : vector<8x32xf32>
    %11 = tpu.matmul %9, %10, %cst_8 {dimension_numbers = #tpu.dot_dimension_numbers<[1], [0], [0], [1], [0, 0, 1, 1], [], []>} : vector<8x16xbf16>, vector<16x32xbf16>, vector<8x32xf32> -> vector<8x32xf32>
    %c0_9 = arith.constant 0 : index
    %c0_10 = arith.constant 0 : index
    %12 = vector.load %arg6[%c0_9, %c0_10] : memref<1x32xf32, #tpu.memory_space<vmem>>, vector<1x32xf32>
    %13 = vector.broadcast %12 : vector<1x32xf32> to vector<8x32xf32>
    %14 = arith.addf %11, %13 : vector<8x32xf32>
    %c0_11 = arith.constant 0 : index
    %c0_12 = arith.constant 0 : index
    %15 = vector.load %arg2[%c0_11, %c0_12] : memref<8x32xf32, #tpu.memory_space<vmem>>, vector<8x32xf32>
    %16 = arith.addf %14, %15 : vector<8x32xf32>
    %c0_13 = arith.constant 0 : index
    %c0_14 = arith.constant 0 : index
    %17 = vector.load %arg7[%c0_13, %c0_14] : memref<8x32xf32, #tpu.memory_space<vmem>>, vector<8x32xf32>
    tpu.vector_store %arg7[%c0_13, %c0_14], %16 {strides = array<i32>} : memref<8x32xf32, #tpu.memory_space<vmem>>, vector<8x32xf32>,
    return
  }
  func.func @transform_0(%arg0: i32) -> (i32, i32) {
    %c0_i32 = arith.constant 0 : i32
    %c0_i32_0 = arith.constant 0 : i32
    return %arg0, %c0_i32 : i32, i32
  }
  func.func @transform_1(%arg0: i32) -> (i32, i32) {
    %c0_i32 = arith.constant 0 : i32
    %c0_i32_0 = arith.constant 0 : i32
    return %arg0, %c0_i32 : i32, i32
  }
  func.func @transform_2(%arg0: i32) -> (i32, i32) {
    %c0_i32 = arith.constant 0 : i32
    %c0_i32_0 = arith.constant 0 : i32
    %c0_i32_1 = arith.constant 0 : i32
    return %c0_i32, %c0_i32_0 : i32, i32
  }
  func.func @transform_3(%arg0: i32) -> (i32, i32) {
    %c0_i32 = arith.constant 0 : i32
    %c0_i32_0 = arith.constant 0 : i32
    %c0_i32_1 = arith.constant 0 : i32
    return %c0_i32, %c0_i32_0 : i32, i32
  }
  func.func @transform_4(%arg0: i32) -> (i32, i32) {
    %c0_i32 = arith.constant 0 : i32
    %c0_i32_0 = arith.constant 0 : i32
    %c0_i32_1 = arith.constant 0 : i32
    return %c0_i32, %c0_i32_0 : i32, i32
  }
  func.func @transform_5(%arg0: i32) -> (i32, i32) {
    %c0_i32 = arith.constant 0 : i32
    %c0_i32_0 = arith.constant 0 : i32
    %c0_i32_1 = arith.constant 0 : i32
    return %c0_i32, %c0_i32_0 : i32, i32
  }
  func.func @transform_6(%arg0: i32) -> (i32, i32) {
    %c0_i32 = arith.constant 0 : i32
    %c0_i32_0 = arith.constant 0 : i32
    return %arg0, %c0_i32 : i32, i32
  }
}

</mosaic_0001>

<bundles_post_ra>
// kernel: tpu_custom_call.1
= control target key start
LH: loop header
LB: loop body
LE: loop exit
PB: predicated region body
PF: predicated region fallthrough
CT: control target
= control target key end

     0   :  { %11 = vsyncpa [#allocation3], 0  ;;  %s764_s0 = inlined_call_operand.vmem [shape: f32[16,4], index: 0, kind: input, shape index: {}]   ;;  %s765_s1 = inlined_call_operand.vmem [shape: f32[16,32], index: 1, kind: input, shape index: {}]   ;;  %s766_s2 = inlined_call_operand.vmem [shape: bf16[4,16], index: 2, kind: input, shape index: {}]   ;;  %s767_s3 = inlined_call_operand.vmem [shape: f32[1,16], index: 3, kind: input, shape index: {}]   ;;  %s768_s4 = inlined_call_operand.vmem [shape: bf16[16,32], index: 4, kind: input, shape index: {}]   ;;  %s769_s5 = inlined_call_operand.vmem [shape: f32[1,32], index: 5, kind: input, shape index: {}]   ;;  %s770_s6 = inlined_call_operand.hbm [shape: f32[16,32], index: 6, kind: output, shape index: {}]  }
   0x1   :  { %13 = vsyncpa [#allocation3 + $0x1], 0  ;;  %s649_s21 = smov 0   ;;  %s651_s22 = smov 0  }
   0x2   :  { %s653_s23 = smov 0   ;;  %s655_s24 = smov 0  }
   0x3 LB: > { %s670_s25 = sadd.s32 4294967295, %s609_s24   ;;  %s473_s26 = sadd.s32 4294967294, %s609_s24   ;;  %s609_s24 = sphi %s655_s24, %s776_s24   ;;  %s605_s23 = sphi %s653_s23, %s775_s23   ;;  %s601_s22 = sphi %s651_s22, %s774_s22   ;;  %s597_s21 = sphi %s649_s21, %s773_s21  }
   0x4   : > { %s674_s27 = sadd.s32 1, %s609_s24   ;;  %s162_s28 = sadd.s32 1, %s605_s23 }
   0x5   : > { %s159_s29 = ssub.s32 %s609_s24, %s674_s27  ;;  %p172_p0 = scmp.ne.s32.totalorder %s605_s23, %s601_s22 }
   0x6   : > { %p160_p1 = scmp.eq.s32.totalorder %s159_s29, 0  ;;  %p173_p2 = scmp.eq.s32.totalorder %s670_s25, 1 }
   0x7   : > { %p178_p3 = scmp.ne.s32.totalorder %s601_s22, %s597_s21  ;;  %p179_p4 = scmp.eq.s32.totalorder %s473_s26, 1 }
   0x8   : > { %s685_s30 = scalar_select %p160_p1, %s605_s23, %s162_s28  }
   0x9   : > { %p687_p5 = por %p173_p2, %p172_p0  ;;  %p691_p6 = por %p179_p4, %p178_p3 }
   0xa   : > { %p476_p7 = scmp.ge.s32.totalorder %s609_s24, 1  ;;  %p223_p8 = scmp.lt.s32.totalorder %s609_s24, 3 }
   0xc   : > { %p224_p9 = pnand %p476_p7, %p223_p8 }
   0xd   : > { %v267_v0 = vld [vmem:[%s766_s2] sm:$0x3] (!%p224_p9)  ;;  %vm279_vm0 = vcmask (!%p224_p9), 1041408   ;;  %p256_p10 = scmp.lt.s32.totalorder (!%p224_p9), %s670_s25, 1  ;;  %v611_v1 = vmov (!%p224_p9), 0.0   ;;  %vm612_vm1 = vmmov (!%p224_p9), 0  }
   0xe   : > { %227 = sbr.rel (%p224_p9) target bundleno = 476 (0x1dc), region = 44  ;;  %493 = vmatprep.subr.bf16.mxu0 (!%p224_p9), %v611_v1  ;;  %v281_v2 = vsel (!%p224_p9), %vm279_vm0, %v267_v0, 0  ;;  %495 = vmatprep.mubr.msk.bf16.mxu0 (!%p224_p9), %vm612_vm1, %v611_v1  ;;  %vm275_vm2 = vcmask (!%p224_p9), 31744   ;;  %v546_v5 = vld [vmem:[%s768_s4] sm:$0xff] (!%p224_p9)   ;;  %vm340_vm3 = vcmask (!%p224_p9), 130048   ;;  %s253_s20 = sand.u32 (!%p224_p9), 1, %s601_s22  }
   0xf   : > { %494 = vmatpush3.bf16.msra.mxu0 (!%p224_p9), %v281_v2  ;;  %499 = vmatprep.subr.bf16.mxu1 (!%p224_p9), %v611_v1  ;;  %v480_v6 = vld [vmem:[%s767_s3] ss:$0 sm:$0xff] (!%p224_p9)  ;;  %s477_s26 = sshll.u32 (!%p224_p9), %s253_s20, 3  ;;  %s486_s13 = sshll.u32 (!%p224_p9), %s670_s25, 7  ;;  %vm386_vm4 = vcmask (!%p224_p9), 261120  }
  0x10   : > { %501 = vmatprep.mubr.msk.bf16.mxu1 (!%p224_p9), %vm612_vm1, %v611_v1  ;;  %500 = vmatpush3.bf16.msra.mxu1 (!%p224_p9), %v546_v5  ;;  %v482_v14 = vld [vmem:[%s769_s5] ss:$0 sm:$0xff] (!%p224_p9)  ;;  %s255_s14 = scalar_lea.vmem (!%p224_p9), [#allocation2], %s477_s26  ;;  %s613_s19 = smov (!%p224_p9), [#allocation2]  }
  0x11   : > { %s551_s26 = sshll.u32 (!%p224_p9), %s613_s19, 4  ;;  %s552_s26 = int_to_ptr.vmem [resolvable:$false] %s551_s26 }
  0x12   : > { %s553_s28 = scalar_lea.vmem (!%p224_p9), %s552_s26, 256 }
  0x15   : > { %s257_s11 = scalar_select %p256_p10, %s670_s25, 1 }
  0x16   : > { %s389_s25 = scalar_lea.sflag [#allocation3], %s253_s20 }
  0x17   : > { %s478_s12 = sshll.u32 %s257_s11, 3 }
  0x18   : > { %s259_s15 = scalar_lea.vmem %s764_s0, %s478_s12  ;;  %s263_s9 = scalar_lea.vmem %s765_s1, %s478_s12 }
  0x19   : > { %v265_v3 = vld [vmem:[%s259_s15] sm:$0xff]  ;;  %s402_s15 = sshll.u32 %s255_s14, 4  ;;  %s722_s12 = scalar_lea.hbm %s770_s6, %s486_s13  ;;  %s724_s15 = int_to_ptr.vmem [resolvable:$true] %s402_s15 }
  0x1a   : > { %v266_v4 = vpack.c.bf16 %v265_v3, %v265_v3  ;;  %v384_v16 = vld [vmem:[%s263_s9] sm:$0xff]  ;;  %s547_s18 = scalar_lea.vmem %s724_s15, 128  ;;  %p554_p0 = scmp.lt.s32.totalorder %s724_s15, %s552_s26 }
  0x1b   : > { %p548_p11 = scmp.ne.s32.totalorder %s724_s15, %s547_s18  ;;  %p555_p1 = scmp.lt.s32.totalorder %s553_s28, %s547_s18 }
  0x1c   : > { %496 = vmatmul.mubr.msk.bf16.vlgmr.msra.gmra.mrb[0].mxu0 %vm275_vm2, %v266_v4 }
  0x1d   : > { %p549_p12 = pnand %p548_p11, %p687_p5  ;;  %p556_p2 = por %p555_p1, %p554_p0 }
  0x1f   : > { %p550_p13 = pneg %p549_p12 }
  0x21   : > { %p557_p3 = pnand %p556_p2, %p550_p13 }
  0xef   : > { %v317_v7 = vpop.f32.mrb[0].mxu0 }
  0xf0   : > { %v318_v8 = vadd.f32 %v480_v6, %v317_v7  ;;  %v497_v9 = vpop.f32.mrb[1].mxu0 }
  0xf1   : > { %v320_v10 = vpop.f32.mrb[2].mxu0 }
  0xf2   : > { %v323_v11 = vmax.f32 %v318_v8, 0.0  ;;  %v498_v12 = vpop.f32.mrb[3].mxu0 }
  0xf4   : > { %v324_v13 = vpack.c.bf16 %v323_v11, %v323_v11 }
  0xf6   : > { %502 = vmatmul.mubr.msk.bf16.vlgmr.msra.gmra.mrb[0].mxu1 %vm340_vm3, %v324_v13 }
 0x1c9   : > { %v378_v15 = vpop.f32.mrb[0].mxu1 }
 0x1ca   : > { %v379_v17 = vadd.f32 %v482_v14, %v378_v15  ;;  %v503_v18 = vpop.f32.mrb[1].mxu1 }
 0x1cb   : > { %v381_v19 = vpop.f32.mrb[2].mxu1 }
 0x1cc   : > { %v385_v20 = vadd.f32 %v384_v16, %v379_v17  ;;  %v504_v21 = vpop.f32.mrb[3].mxu1 }
 0x1ce   : > { %387 = vst.msk [vmem:[%s255_s14] sm:$0xff] %vm386_vm4, %v385_v20 }
 0x1cf   : > { %560 = shalt.err (!%p557_p3)
}
 0x1d0   : > { %s561_s20 = scalar_lea.hbm %s722_s12, 128  ;;  %s565_s10 = scalar_lea.hbm %s770_s6, 256 }
 0x1d1   : > { %p562_p4 = scmp.ne.s32.totalorder %s722_s12, %s561_s20  ;;  %p566_p9 = scmp.lt.u32.totalorder %s722_s12, %s770_s6 }
 0x1d2   : > { %p567_p10 = scmp.lt.u32.totalorder %s565_s10, %s561_s20  ;;  %p569_p12 = scmp.lt.u32.totalorder %s561_s20, %s722_s12 }
 0x1d3   : > { %p563_p7 = pnand %p562_p4, %p687_p5 }
 0x1d4   : > { %p568_p11 = por %p567_p10, %p566_p9 }
 0x1d5   : > { %p564_p8 = pneg %p563_p7 }
 0x1d6   : > { %p570_p13 = por %p569_p12, %p568_p11 }
 0x1d8   : > { %p571_p0 = pnand %p570_p13, %p564_p8 }
 0x1da   : > { %574 = shalt.err (!%p571_p0)
}
 0x1db   : > { %505 = dma.vmem_to_hbm [thread:$0]  (%p687_p5), %s724_s15, 128, %s722_s12, %s389_s25  }
 0x1dc PF: > { %p511_p1 = scmp.ge.s32.totalorder %s609_s24, 2  ;;  %s414_s14 = sand.u32 1, %s597_s21  }
 0x1dd   : > { %s415_s16 = scalar_lea.sflag [#allocation3], %s414_s14 }
 0x1de   : > { %p508_p2 = pnand %p511_p1, %p691_p6 }
 0x1e0   : > { %592 = dma.done.wait (!%p508_p2), %s415_s16, 128  }
 0x1e1   : > { %594 = vsyncadd (!%p508_p2), %s415_s16, 4294967168  ;;  %p16_p3 = scmp.ge.s32.totalorder %s674_s27, 4   ;;  %s773_s21 = smov %s601_s22 }
 0x1e2   : > { %s774_s22 = smov %s605_s23  ;;  %s775_s23 = smov %s685_s30 }
 0x1e3   : > { %s776_s24 = smov %s674_s27  ;;  %18 = sbr.rel (!%p16_p3) target bundleno = 3 (0x3), region = 82 }
 0x1ea   :  { %420 = vsyncpa [#allocation3], 1 }
 0x1eb   :  { %422 = vsyncpa [#allocation3 + $0x1], 1 }

</bundles_post_ra>
